<compile_context>
chip_gen: v5e
topology: v5e:2x2
jax: 0.10.0
libtpu: 0.0.40
codegen_flags: <defaults>
</compile_context>

<pallas_src>
import functools

import jax
import jax.numpy as jnp
from jax.experimental import pallas as pl
from jax.experimental.pallas import tpu as pltpu

STYLE_DIM = 512


def _round_up(x, m):
    return ((x + m - 1) // m) * m


def _direction_kernel(x_ref, qt_ref, o_ref):
    # x_ref: (TB, D) VMEM tile (bf16), qt_ref: (D, 512) resident VMEM tile
    # (bf16), o_ref: (TB, 512).  out = x @ Q^T  (== sum_dim1 diag(x) @ Q.T),
    # accumulated in f32 on the MXU.
    o_ref[...] = jnp.dot(
        x_ref[...], qt_ref[...], preferred_element_type=jnp.float32
    ).astype(o_ref.dtype)


def prepare_direction_q(weight, dtype=jnp.bfloat16):
    """Compute Q^T once per weight update (hoisted out of the forward path).

    Args:
      weight: (512, D) float32 parameter, D = lip_dim + pose_dim
      dtype:  storage dtype for the cached RHS (bf16 = native MXU input).
    Returns:
      (D, 512) Q^T in the canonical (K, N) MXU RHS layout.
    """
    # TODO(synk): Householder QR has no clean Pallas TPU equivalent; it stays
    # in plain JAX glue.  QR column signs are not unique; force diag(R) > 0
    # here if bit-for-bit parity with torch.qr is ever required.
    q, _ = jnp.linalg.qr(weight.astype(jnp.float32) + 1e-8, mode="reduced")
    return jnp.transpose(q).astype(dtype)  # (D, 512)


def direction_forward(
    x,
    q_t,
    *,
    block_b=2048,
    min_pallas_batch=64,
    out_dtype=jnp.float32,
):
    """Pallas implementation of Direction.forward(input) for input != None.

    Args:
      x:   (B, D) float32 (or bf16), D = lip_dim + pose_dim
      q_t: (D, 512) cached output of prepare_direction_q(weight), bf16.
    Returns:
      (B, 512) out_dtype
    """
    B, D = x.shape
    N = q_t.shape[1]  # 512
    cdtype = q_t.dtype
    xb = x.astype(cdtype)

    # Tiny batches: custom-call launch + pipeline prologue would dominate a
    # K<=26 matmul; let XLA do (and fuse) it.  Same math, same f32 accumulate.
    if B < min_pallas_batch:
        return jnp.dot(xb, q_t, preferred_element_type=jnp.float32).astype(out_dtype)

    # Sublane granularity: 16 rows for packed sub-32-bit dtypes, 8 for f32.
    sub = 16 if jnp.dtype(cdtype).itemsize < 4 else 8

    # Pad B only to the sublane granularity (not to a whole tile).
    b_pad = _round_up(B, sub)

    # Tile-size selection:
    #  * cap at block_b (rounded to the sublane granularity),
    #  * force >= 2 grid steps when possible so v7x's second TC gets work,
    #  * then derive tb from cdiv(b_pad, grid) so padding waste stays small.
    tb_cap = max(sub, (min(block_b, b_pad) // sub) * sub)
    if b_pad >= 2 * sub:
        tb_cap = min(tb_cap, _round_up(pl.cdiv(b_pad, 2), sub))
    grid_n = pl.cdiv(b_pad, tb_cap)
    tb = _round_up(pl.cdiv(b_pad, grid_n), sub)
    b_pad = tb * grid_n

    if b_pad != B:
        xb = jnp.pad(xb, ((0, b_pad - B), (0, 0)))

    csize = jnp.dtype(cdtype).itemsize
    osize = jnp.dtype(out_dtype).itemsize
    # Double-buffered VMEM footprint + margin; keep within every chip's
    # physical VMEM (v7x has 64 MiB) while clearing v5e's 16 MiB default.
    vmem_needed = 2 * (tb * D * csize) + 2 * (D * N * csize) + 2 * (tb * N * osize)
    vmem_limit = int(min(max(vmem_needed + (4 << 20), 16 << 20), 48 << 20))

    out = pl.pallas_call(
        _direction_kernel,
        out_shape=jax.ShapeDtypeStruct((b_pad, N), out_dtype),
        grid_spec=pltpu.PrefetchScalarGridSpec(
            num_scalar_prefetch=0,
            grid=(grid_n,),
            in_specs=[
                pl.BlockSpec((tb, D), lambda i: (i, 0)),  # x: tiled over B
                pl.BlockSpec((D, N), lambda i: (0, 0)),   # Q^T: resident
            ],
            out_specs=pl.BlockSpec((tb, N), lambda i: (i, 0)),  # lane-dense N=512
        ),
        compiler_params=pltpu.CompilerParams(
            # Batch tiles are independent -> megacore / v7x 2-TC sharding.
            dimension_semantics=("parallel",),
            vmem_limit_bytes=vmem_limit,
        ),
        cost_estimate=pl.CostEstimate(
            flops=2 * b_pad * D * N,
            transcendentals=0,
            bytes_accessed=csize * (b_pad * D + D * N) + osize * b_pad * N,
        ),
    )(xb, q_t)
    return out[:B]


def _reference(weight, x):
    """Literal JAX translation of the PyTorch forward (f32)."""
    q, _ = jnp.linalg.qr(weight.astype(jnp.float32) + 1e-8, mode="reduced")
    input_diag = jax.vmap(jnp.diag)(x.astype(jnp.float32))     # (B, D, D)
    return jnp.sum(jnp.matmul(input_diag, q.T), axis=1)        # (B, 512)


if __name__ == "__main__":
    # Shapes consistent with the module defaults: weight is (512, D) with
    # D = lip_dim + pose_dim = 20 + 6 = 26.
    lip_dim, pose_dim = 20, 6
    D = lip_dim + pose_dim

    key = jax.random.PRNGKey(0)
    k_w, k_x1, k_x2 = jax.random.split(key, 3)
    weight = jax.random.normal(k_w, (512, D), dtype=jnp.float32)  # nn.Parameter(randn(512, D))

    # QR is computed once (per weight update), not per forward.
    q_t = prepare_direction_q(weight)

    fwd = jax.jit(functools.partial(direction_forward))
    fwd_force_pallas = jax.jit(
        functools.partial(direction_forward, min_pallas_batch=0)
    )

    # 1) Moderate, non-aligned batch -> Pallas path (padding + 2-step grid).
    B1 = 100
    x1 = jax.random.normal(k_x1, (B1, D), dtype=jnp.float32)
    out1 = jax.block_until_ready(fwd(x1, q_t))
    ref1 = _reference(weight, x1)
    assert out1.shape == (B1, 512), out1.shape
    assert jnp.allclose(out1, ref1, rtol=2e-2, atol=1e-2), "mismatch (Pallas, B=100)"

    # 2) Tiny batch through the Pallas path explicitly (padding to one tile).
    B2 = 2
    x2 = jax.random.normal(k_x2, (B2, D), dtype=jnp.float32)
    out2 = jax.block_until_ready(fwd_force_pallas(x2, q_t))
    ref2 = _reference(weight, x2)
    assert out2.shape == (B2, 512), out2.shape
    assert jnp.allclose(out2, ref2, rtol=2e-2, atol=1e-2), "mismatch (Pallas, B=2)"

    # 3) Tiny batch through the default wrapper (XLA fallback path).
    out3 = jax.block_until_ready(fwd(x2, q_t))
    assert jnp.allclose(out3, ref2, rtol=2e-2, atol=1e-2), "mismatch (fallback, B=2)"

    print("KERNEL_OK")
</pallas_src>

<mosaic_0001>
module attributes {stable_mosaic.version = 11 : i64} {
  func.func @_direction_kernel(%arg0: i32, %arg1: memref<64x26xbf16, #tpu.memory_space<vmem>>, %arg2: memref<26x512xbf16, #tpu.memory_space<vmem>>, %arg3: memref<64x512xf32, #tpu.memory_space<vmem>>) attributes {dimension_semantics = [#tpu.dimension_semantics<parallel>], iteration_bounds = array<i64: 2>, scalar_prefetch = 0 : i64, scratch_operands = 0 : i64, tpu.core_type = #tpu.core_type<tc>, window_params = [{transform_indices = @transform_0, window_bounds = array<i64: 64, 26>}, {pipeline_mode = #tpu.pipeline_mode<synchronous>, transform_indices = @transform_1, window_bounds = array<i64: 26, 512>}, {transform_indices = @transform_2, window_bounds = array<i64: 64, 512>}]} {
    %c0 = arith.constant 0 : index
    %c0_0 = arith.constant 0 : index
    %0 = vector.load %arg1[%c0, %c0_0] : memref<64x26xbf16, #tpu.memory_space<vmem>>, vector<64x26xbf16>
    %c0_1 = arith.constant 0 : index
    %c0_2 = arith.constant 0 : index
    %1 = vector.load %arg2[%c0_1, %c0_2] : memref<26x512xbf16, #tpu.memory_space<vmem>>, vector<26x512xbf16>
    %cst = arith.constant dense<0.000000e+00> : vector<64x512xf32>
    %2 = tpu.matmul %0, %1, %cst {dimension_numbers = #tpu.dot_dimension_numbers<[1], [0], [0], [1], [0, 0, 1, 1], [], []>} : vector<64x26xbf16>, vector<26x512xbf16>, vector<64x512xf32> -> vector<64x512xf32>
    %c0_3 = arith.constant 0 : index
    %c0_4 = arith.constant 0 : index
    %3 = vector.load %arg3[%c0_3, %c0_4] : memref<64x512xf32, #tpu.memory_space<vmem>>, vector<64x512xf32>
    tpu.vector_store %arg3[%c0_3, %c0_4], %2 {strides = array<i32>} : memref<64x512xf32, #tpu.memory_space<vmem>>, vector<64x512xf32>,
    return
  }
  func.func @transform_0(%arg0: i32) -> (i32, i32) {
    %c0_i32 = arith.constant 0 : i32
    %c0_i32_0 = arith.constant 0 : i32
    return %arg0, %c0_i32 : i32, i32
  }
  func.func @transform_1(%arg0: i32) -> (i32, i32) {
    %c0_i32 = arith.constant 0 : i32
    %c0_i32_0 = arith.constant 0 : i32
    %c0_i32_1 = arith.constant 0 : i32
    return %c0_i32, %c0_i32_0 : i32, i32
  }
  func.func @transform_2(%arg0: i32) -> (i32, i32) {
    %c0_i32 = arith.constant 0 : i32
    %c0_i32_0 = arith.constant 0 : i32
    return %arg0, %c0_i32 : i32, i32
  }
}

</mosaic_0001>

<bundles_post_ra>
// kernel: direction_forward.1
= control target key start
LH: loop header
LB: loop body
LE: loop exit
PB: predicated region body
PF: predicated region fallthrough
CT: control target
= control target key end

     0   :  { %s574_s9 = smov 0   ;;  %s703_s0 = inlined_call_operand.vmem [shape: bf16[128,26], index: 0, kind: input, shape index: {}]   ;;  %s704_s1 = inlined_call_operand.vmem [shape: bf16[26,512], index: 1, kind: input, shape index: {}]   ;;  %s705_s2 = inlined_call_operand.vmem [shape: f32[128,512], index: 2, kind: output, shape index: {}]  }
   0x1 LB: > { %s454_s10 = sadd.s32 4294967295, %s557_s9   ;;  %p458_p0 = scmp.ge.s32.totalorder %s557_s9, 1  ;;  %s557_s9 = sphi %s574_s9, %s12_s9  }
   0x2   : > { %p113_p1 = scmp.lt.s32.totalorder %s557_s9, 3 }
   0x4   : > { %p114_p2 = pnand %p458_p0, %p113_p1 }
   0x5   : > { %s588_s15 = sshll.u32 (!%p114_p2), %s454_s10, 3 }
   0x6   : > { %117 = sbr.rel (%p114_p2) target bundleno = 214 (0xd6), region = 28  ;;  %p137_p3 = scmp.lt.s32.totalorder (!%p114_p2), %s588_s15, 15 }
   0xb   : > { %v498_v0 = vld [vmem:[%s704_s1 + $0x20] sm:$0xf]  ;;  %v541_v1 = vld [vmem:[%s704_s1 + $0x2c] sm:$0x10]  ;;  %vm235_vm0 = vcmask 1044480   ;;  %s707_s15 = smov (!%p137_p3, %s588_s15), 15 }
   0xc   : > { %v499_v2 = vor.u32 %v541_v1, %v498_v0  ;;  %v539_v3 = vld [vmem:[%s704_s1 + $0x24] sm:$0xf]  ;;  %v500_v4 = vld [vmem:[%s704_s1 + $0x30] sm:$0x10]  ;;  %v506_v5 = vld [vmem:[%s704_s1 + $0x28] sm:$0xf] }
   0xd   : > { %v503_v6 = vor.u32 %v539_v3, %v500_v4  ;;  %v542_v7 = vld [vmem:[%s704_s1 + $0x34] sm:$0x10]  ;;  %v540_v8 = vld [vmem:[%s704_s1 + $0x2c] sm:$0xf]  ;;  %v508_v9 = vld [vmem:[%s704_s1 + $0x38] sm:$0x10] }
   0xe   : > { %v237_v10 = vsel %vm235_vm0, %v499_v2, 0  ;;  %v507_v11 = vor.u32 %v542_v7, %v506_v5  ;;  %v511_v12 = vor.u32 %v540_v8, %v508_v9  ;;  %v482_v13 = vld [vmem:[%s704_s1] sm:$0xf]  ;;  %v537_v14 = vld [vmem:[%s704_s1 + $0xc] sm:$0xf0]  ;;  %s460_s18 = sshll.u32 %s707_s15, 2 }
   0xf   : > { %254 = vmatpush.bf16.msra.mxu0 %v237_v10  ;;  %v240_v15 = vsel %vm235_vm0, %v503_v6, 0  ;;  %v483_v16 = vor.u32 %v537_v14, %v482_v13  ;;  %v535_v17 = vld [vmem:[%s704_s1 + $0x4] sm:$0xf]  ;;  %v484_v18 = vld [vmem:[%s704_s1 + $0x10] sm:$0xf0]  ;;  %s140_s21 = scalar_lea.vmem %s703_s0, %s460_s18  ;;  %vm222_vm1 = vcmask 211968  }
  0x10   : > { %283 = vmatpush.bf16.msra.mxu1 %v240_v15  ;;  %v243_v19 = vsel %vm235_vm0, %v507_v11, 0  ;;  %v246_v20 = vsel %vm235_vm0, %v511_v12, 0  ;;  %v487_v21 = vor.u32 %v535_v17, %v484_v18  ;;  %v490_v22 = vld [vmem:[%s704_s1 + $0x8] sm:$0xf]  ;;  %v538_v23 = vld [vmem:[%s704_s1 + $0x14] sm:$0xf0] }
  0x11   : > { %312 = vmatpush.bf16.msra.mxu2 %v243_v19  ;;  %341 = vmatpush.bf16.msra.mxu3 %v246_v20  ;;  %v491_v24 = vor.u32 %v538_v23, %v490_v22  ;;  %v536_v25 = vld [vmem:[%s704_s1 + $0xc] sm:$0xf]  ;;  %v492_v26 = vld [vmem:[%s704_s1 + $0x18] sm:$0xf0]  ;;  %v531_v28 = vld [vmem:[%s140_s21] sm:$0xff]  ;;  %s530_s22 = sshll.u32 %s707_s15, 5 }
  0x12   : > { %v495_v27 = vor.u32 %v536_v25, %v492_v26  ;;  %v532_v29 = vld [vmem:[%s140_s21 + $0x8] sm:$0xff]  ;;  %v533_v30 = vld [vmem:[%s140_s21 + $0x10] sm:$0xff]  ;;  %v534_v31 = vld [vmem:[%s140_s21 + $0x18] sm:$0xff]  ;;  %s666_s25 = scalar_lea.vmem %s705_s2, %s530_s22 }
  0x13   : > { %255 = vmatpush.bf16.msra.mxu0 %v483_v16 }
  0x14   : > { %284 = vmatpush.bf16.msra.mxu1 %v487_v21 }
  0x15   : > { %313 = vmatpush.bf16.msra.mxu2 %v491_v24  ;;  %342 = vmatpush.bf16.msra.mxu3 %v495_v27 }
  0x16   : > { %512 = vmatmul.msk.bf16.vlgmr.msra.gmra.mxu0 %vm222_vm1, %v531_v28 }
  0x17   : > { %516 = vmatmul.msk.bf16.vlgmr.msra.gmra.mxu1 %vm222_vm1, %v531_v28 }
  0x18   : > { %520 = vmatmul.msk.bf16.vlgmr.msra.gmra.mxu2 %vm222_vm1, %v531_v28  ;;  %524 = vmatmul.msk.bf16.vlgmr.msra.gmra.mxu3 %vm222_vm1, %v531_v28 }
  0x26   : > { %513 = vmatmul.msk.bf16.gmra.mxu0 %vm222_vm1, %v532_v29 }
  0x27   : > { %517 = vmatmul.msk.bf16.gmra.mxu1 %vm222_vm1, %v532_v29 }
  0x28   : > { %521 = vmatmul.msk.bf16.gmra.mxu2 %vm222_vm1, %v532_v29  ;;  %525 = vmatmul.msk.bf16.gmra.mxu3 %vm222_vm1, %v532_v29 }
  0x36   : > { %514 = vmatmul.msk.bf16.gmra.mxu0 %vm222_vm1, %v533_v30 }
  0x37   : > { %518 = vmatmul.msk.bf16.gmra.mxu1 %vm222_vm1, %v533_v30 }
  0x38   : > { %522 = vmatmul.msk.bf16.gmra.mxu2 %vm222_vm1, %v533_v30  ;;  %526 = vmatmul.msk.bf16.gmra.mxu3 %vm222_vm1, %v533_v30 }
  0x46   : > { %515 = vmatmul.msk.bf16.gmra.mxu0 %vm222_vm1, %v534_v31 }
  0x47   : > { %519 = vmatmul.msk.bf16.gmra.mxu1 %vm222_vm1, %v534_v31 }
  0x48   : > { %523 = vmatmul.msk.bf16.gmra.mxu2 %vm222_vm1, %v534_v31  ;;  %527 = vmatmul.msk.bf16.gmra.mxu3 %vm222_vm1, %v534_v31 }
  0x93   : > { %v257_v32 = vpop.f32.mrf.mxu0 }
  0x94   : > { %v286_v33 = vpop.f32.mrf.mxu1  ;;  %364 = vst [vmem:[%s666_s25] sm:$0xff] %v257_v32 }
  0x95   : > { %365 = vst [vmem:[%s666_s25 + $0x8] sm:$0xff] %v286_v33 }
  0x9b   : > { %v315_v34 = vpop.f32.mrf.mxu2  ;;  %v344_v35 = vpop.f32.mrf.mxu3 }
  0x9c   : > { %366 = vst [vmem:[%s666_s25 + $0x10] sm:$0xff] %v315_v34  ;;  %v259_v36 = vpop.f32.mrf.mxu0  ;;  %v288_v37 = vpop.f32.mrf.mxu1 }
  0x9d   : > { %367 = vst [vmem:[%s666_s25 + $0x18] sm:$0xff] %v344_v35 }
  0x9e   : > { %368 = vst [vmem:[%s666_s25 + $0x20] sm:$0xff] %v259_v36 }
  0x9f   : > { %369 = vst [vmem:[%s666_s25 + $0x28] sm:$0xff] %v288_v37 }
  0xa3   : > { %v317_v38 = vpop.f32.mrf.mxu2  ;;  %v346_v39 = vpop.f32.mrf.mxu3 }
  0xa4   : > { %370 = vst [vmem:[%s666_s25 + $0x30] sm:$0xff] %v317_v38  ;;  %v262_v40 = vpop.f32.mrf.mxu0  ;;  %v291_v41 = vpop.f32.mrf.mxu1 }
  0xa5   : > { %371 = vst [vmem:[%s666_s25 + $0x38] sm:$0xff] %v346_v39 }
  0xa6   : > { %372 = vst [vmem:[%s666_s25 + $0x40] sm:$0xff] %v262_v40 }
  0xa7   : > { %373 = vst [vmem:[%s666_s25 + $0x48] sm:$0xff] %v291_v41 }
  0xab   : > { %v320_v42 = vpop.f32.mrf.mxu2  ;;  %v349_v43 = vpop.f32.mrf.mxu3 }
  0xac   : > { %374 = vst [vmem:[%s666_s25 + $0x50] sm:$0xff] %v320_v42  ;;  %v264_v44 = vpop.f32.mrf.mxu0  ;;  %v293_v45 = vpop.f32.mrf.mxu1 }
  0xad   : > { %375 = vst [vmem:[%s666_s25 + $0x58] sm:$0xff] %v349_v43 }
  0xae   : > { %376 = vst [vmem:[%s666_s25 + $0x60] sm:$0xff] %v264_v44 }
  0xaf   : > { %377 = vst [vmem:[%s666_s25 + $0x68] sm:$0xff] %v293_v45 }
  0xb3   : > { %v322_v46 = vpop.f32.mrf.mxu2  ;;  %v351_v47 = vpop.f32.mrf.mxu3 }
  0xb4   : > { %378 = vst [vmem:[%s666_s25 + $0x70] sm:$0xff] %v322_v46  ;;  %v267_v48 = vpop.f32.mrf.mxu0  ;;  %v296_v49 = vpop.f32.mrf.mxu1 }
  0xb5   : > { %379 = vst [vmem:[%s666_s25 + $0x78] sm:$0xff] %v351_v47 }
  0xb6   : > { %380 = vst [vmem:[%s666_s25 + $0x80] sm:$0xff] %v267_v48 }
  0xb7   : > { %381 = vst [vmem:[%s666_s25 + $0x88] sm:$0xff] %v296_v49 }
  0xbb   : > { %v325_v50 = vpop.f32.mrf.mxu2  ;;  %v354_v51 = vpop.f32.mrf.mxu3 }
  0xbc   : > { %382 = vst [vmem:[%s666_s25 + $0x90] sm:$0xff] %v325_v50  ;;  %v269_v52 = vpop.f32.mrf.mxu0  ;;  %v298_v53 = vpop.f32.mrf.mxu1 }
  0xbd   : > { %383 = vst [vmem:[%s666_s25 + $0x98] sm:$0xff] %v354_v51 }
  0xbe   : > { %384 = vst [vmem:[%s666_s25 + $0xa0] sm:$0xff] %v269_v52 }
  0xbf   : > { %385 = vst [vmem:[%s666_s25 + $0xa8] sm:$0xff] %v298_v53 }
  0xc3   : > { %v327_v54 = vpop.f32.mrf.mxu2  ;;  %v356_v55 = vpop.f32.mrf.mxu3 }
  0xc4   : > { %386 = vst [vmem:[%s666_s25 + $0xb0] sm:$0xff] %v327_v54  ;;  %v272_v56 = vpop.f32.mrf.mxu0  ;;  %v301_v57 = vpop.f32.mrf.mxu1 }
  0xc5   : > { %387 = vst [vmem:[%s666_s25 + $0xb8] sm:$0xff] %v356_v55 }
  0xc6   : > { %388 = vst [vmem:[%s666_s25 + $0xc0] sm:$0xff] %v272_v56 }
  0xc7   : > { %389 = vst [vmem:[%s666_s25 + $0xc8] sm:$0xff] %v301_v57 }
  0xcb   : > { %v330_v58 = vpop.f32.mrf.mxu2  ;;  %v359_v59 = vpop.f32.mrf.mxu3 }
  0xcc   : > { %390 = vst [vmem:[%s666_s25 + $0xd0] sm:$0xff] %v330_v58  ;;  %v274_v60 = vpop.f32.mrf.mxu0  ;;  %v303_v61 = vpop.f32.mrf.mxu1 }
  0xcd   : > { %391 = vst [vmem:[%s666_s25 + $0xd8] sm:$0xff] %v359_v59 }
  0xce   : > { %392 = vst [vmem:[%s666_s25 + $0xe0] sm:$0xff] %v274_v60 }
  0xcf   : > { %393 = vst [vmem:[%s666_s25 + $0xe8] sm:$0xff] %v303_v61 }
  0xd3   : > { %v332_v62 = vpop.f32.mrf.mxu2  ;;  %v361_v63 = vpop.f32.mrf.mxu3 }
  0xd4   : > { %394 = vst [vmem:[%s666_s25 + $0xf0] sm:$0xff] %v332_v62 }
  0xd5   : > { %395 = vst [vmem:[%s666_s25 + $0xf8] sm:$0xff] %v361_v63 }
  0xd6 PF: > { %s12_s9 = sadd.s32 1, %s557_s9  }
  0xd7   : > { %p9_p4 = scmp.ge.s32.totalorder %s12_s9, 4  }
  0xd9   :  { %11 = sbr.rel (!%p9_p4) target bundleno = 1 (0x1), region = 58 }

</bundles_post_ra>
